<compile_context>
chip_gen: v7x
topology: tpu7x:2x2x1
jax: 0.10.0
libtpu: 0.0.40
codegen_flags: <defaults>
</compile_context>

<pallas_src>
import functools

import jax
import jax.numpy as jnp
from jax import lax
from jax.experimental import pallas as pl
from jax.experimental.pallas import tpu as pltpu

# TODO(synk): xnn.EPS is not available in-script; 1e-5 is a deterministic stand-in
# (canonical ConvNeXt-V2 GRN uses 1e-6 — plumb the real value through `eps=` if it differs).
EPS = 1e-5

_LANE = 128
_MIB = 1024 * 1024
# Sublanes processed per in-kernel chunk: bounds f32 temporaries to ~bt * 64 * 128 * 12 B.
_CHUNK_SUBLANES = 64


def _sublane_multiple(dtype):
    # Packed-sublane tiling: (8,128) f32, (16,128) bf16, (32,128) int8/fp8.
    return {4: 8, 2: 16, 1: 32}.get(jnp.dtype(dtype).itemsize, 8)


def _vmem_budgets():
    """Generation-aware (vmem_limit_bytes, per-step block budget bytes)."""
    try:
        cap = int(getattr(pltpu.get_tpu_info(), "vmem_capacity_bytes", 128 * _MIB))
    except Exception:
        cap = 128 * _MIB
    if cap <= 64 * _MIB:
        # v7x: 64 MiB VMEM per TensorCore -> keep headroom for Mosaic scratch + double buffers.
        return 40 * _MIB, 18 * _MIB
    # v5e / v6e: 128 MiB physical VMEM -> raise the scoped limit so large tiles stay fused.
    return 96 * _MIB, 56 * _MIB


# ----------------------------------------------------------------------------
# Fused single-pass kernel: whole flattened (S*C) row(s) resident per grid step.
# One HBM read of x, one HBM write of out.
# ----------------------------------------------------------------------------
def _grn_fused_kernel(x_ref, gamma_ref, beta_ref, o_ref, *, eps, chunk):
    bt, num_rows, _ = x_ref.shape
    n_full = num_rows // chunk
    rem = num_rows - n_full * chunk

    # Phase 1: per-batch sum of squares, chunked so f32 temps stay O(bt * chunk * 128).
    def chunk_ssq(start, size):
        xs = x_ref[:, pl.ds(start, size), :].astype(jnp.float32)
        return jnp.sum(xs * xs, axis=(1, 2), keepdims=True)          # (bt, 1, 1)

    ssq = jnp.zeros((bt, 1, 1), jnp.float32)
    if n_full > 1:
        def body(i, acc):
            return acc + chunk_ssq(pl.multiple_of(i * chunk, chunk), chunk)
        ssq = lax.fori_loop(0, n_full, body, ssq)
    elif n_full == 1:
        ssq = ssq + chunk_ssq(0, chunk)
    if rem > 0:
        ssq = ssq + chunk_ssq(n_full * chunk, rem)

    # g_x = ||x||_2 over (S, C); mean over the size-1 channel dim of g_x is the identity.
    g = jnp.sqrt(ssq)
    n = g / (g + eps)                                                 # (bt, 1, 1)

    # Phase 2: fused epilogue  out = x * (gamma * n + 1) + beta, chunked like the reduce.
    def apply_chunk(start, size):
        sl = pl.ds(start, size)
        xs = x_ref[:, sl, :].astype(jnp.float32)
        gm = gamma_ref[:, sl, :].astype(jnp.float32)
        bb = beta_ref[:, sl, :].astype(jnp.float32)
        o_ref[:, sl, :] = (xs * (gm * n + 1.0) + bb).astype(o_ref.dtype)

    if n_full > 1:
        @pl.loop(0, n_full)
        def _(i):
            apply_chunk(pl.multiple_of(i * chunk, chunk), chunk)
    elif n_full == 1:
        apply_chunk(0, chunk)
    if rem > 0:
        apply_chunk(n_full * chunk, rem)


def _grn_fused(x_t, gamma_t, beta_t, eps, bt, vmem_limit):
    B, R, _ = x_t.shape
    chunk = min(R, _CHUNK_SUBLANES)
    return pl.pallas_call(
        functools.partial(_grn_fused_kernel, eps=float(eps), chunk=chunk),
        out_shape=jax.ShapeDtypeStruct((B, R, _LANE), x_t.dtype),
        grid_spec=pltpu.PrefetchScalarGridSpec(
            num_scalar_prefetch=0,
            grid=(B // bt,),
            in_specs=[
                pl.BlockSpec((bt, R, _LANE), lambda i: (i, 0, 0)),   # x rows for this step
                pl.BlockSpec((1, R, _LANE), lambda i: (0, 0, 0)),    # gamma (constant -> resident)
                pl.BlockSpec((1, R, _LANE), lambda i: (0, 0, 0)),    # beta  (constant -> resident)
            ],
            out_specs=pl.BlockSpec((bt, R, _LANE), lambda i: (i, 0, 0)),
        ),
        compiler_params=pltpu.CompilerParams(
            dimension_semantics=("parallel",),
            vmem_limit_bytes=vmem_limit,
        ),
    )(x_t, gamma_t, beta_t)


# ----------------------------------------------------------------------------
# Two-pass fallback: reduce pass (n_x per batch) + apply pass.
# Used when one flattened (S*C) row does not fit the VMEM block budget.
# ----------------------------------------------------------------------------
def _grn_reduce_kernel(x_ref, nx_ref, *, eps):
    """Accumulate sum of squares across the k axis; finalize to n_x = g/(g+eps) on last step."""
    @pl.when(pl.program_id(1) == 0)
    def _():
        nx_ref[...] = jnp.zeros_like(nx_ref)

    x32 = x_ref[...].astype(jnp.float32)                              # (1, rt, 128)
    nx_ref[...] += jnp.sum(x32 * x32, axis=(1, 2), keepdims=True)

    @pl.when(pl.program_id(1) == pl.num_programs(1) - 1)
    def _():
        g = jnp.sqrt(nx_ref[...])
        nx_ref[...] = g / (g + eps)


def _grn_apply_kernel(x_ref, gamma_ref, beta_ref, nx_ref, o_ref):
    """out = x * (gamma * n_x + 1) + beta; n_x is a per-batch scalar read from SMEM."""
    n = nx_ref[pl.program_id(1)]                                      # batch = inner grid axis
    coeff = gamma_ref[...].astype(jnp.float32) * n + 1.0
    o_ref[...] = (x_ref[...].astype(jnp.float32) * coeff
                  + beta_ref[...].astype(jnp.float32)).astype(o_ref.dtype)


def _grn_two_pass(x_flat, gamma_flat, beta_flat, eps, budget, vmem_limit):
    B, N = x_flat.shape
    dtype = x_flat.dtype
    itemsize = jnp.dtype(dtype).itemsize
    p_itemsize = jnp.dtype(gamma_flat.dtype).itemsize
    sub = _sublane_multiple(dtype)

    R0 = pl.cdiv(N, _LANE)
    # Apply-pass per-128-lane-row working set: 2x x-in + 2x out + 2x gamma + 2x beta buffers
    # plus ~2 f32 temporary rows.
    per_row = _LANE * (4 * itemsize + 4 * p_itemsize + 8)
    rt = max(sub, (budget // per_row) // sub * sub)
    rt = min(rt, pl.cdiv(R0, sub) * sub)
    n_k = pl.cdiv(R0, rt)
    rows_total = n_k * rt
    n_pad = rows_total * _LANE

    def to_tiles(a):
        # Zero padding is safe: zeros add nothing to ||x||; padded outputs are sliced off.
        if a.shape[1] != n_pad:
            a = jnp.pad(a, ((0, 0), (0, n_pad - a.shape[1])))
        return a.reshape(a.shape[0], rows_total, _LANE)

    x_t = to_tiles(x_flat)
    g_t = to_tiles(gamma_flat)
    b_t = to_tiles(beta_flat)

    # Pass 1: per-batch n_x, accumulated along the ("arbitrary") k axis, finalized in place.
    nx = pl.pallas_call(
        functools.partial(_grn_reduce_kernel, eps=float(eps)),
        out_shape=jax.ShapeDtypeStruct((B, 1, 1), jnp.float32),
        grid_spec=pltpu.PrefetchScalarGridSpec(
            num_scalar_prefetch=0,
            grid=(B, n_k),
            in_specs=[pl.BlockSpec((1, rt, _LANE), lambda b, k: (b, k, 0))],
            out_specs=pl.BlockSpec((1, 1, 1), lambda b, k: (b, 0, 0)),
        ),
        compiler_params=pltpu.CompilerParams(
            dimension_semantics=("parallel", "arbitrary"),
            vmem_limit_bytes=vmem_limit,
        ),
    )(x_t)

    # Pass 2: grid (n_k, B) with batch innermost so the gamma/beta tiles (block index
    # (0, k, 0)) stay VMEM-resident across the inner batch loop — fetched n_k times total
    # instead of B * n_k, roughly halving pass-2 HBM reads.  n_x arrives as a whole (B,)
    # SMEM array (no per-step (1,1,1) DMA + semaphore wait).
    out_t = pl.pallas_call(
        _grn_apply_kernel,
        out_shape=jax.ShapeDtypeStruct((B, rows_total, _LANE), dtype),
        grid_spec=pltpu.PrefetchScalarGridSpec(
            num_scalar_prefetch=0,
            grid=(n_k, B),
            in_specs=[
                pl.BlockSpec((1, rt, _LANE), lambda k, b: (b, k, 0)),   # x tile
                pl.BlockSpec((1, rt, _LANE), lambda k, b: (0, k, 0)),   # gamma (resident over b)
                pl.BlockSpec((1, rt, _LANE), lambda k, b: (0, k, 0)),   # beta  (resident over b)
                pl.BlockSpec(memory_space=pltpu.MemorySpace.SMEM),       # n_x, whole (B,) array
            ],
            out_specs=pl.BlockSpec((1, rt, _LANE), lambda k, b: (b, k, 0)),
        ),
        compiler_params=pltpu.CompilerParams(
            dimension_semantics=("parallel", "parallel"),
            vmem_limit_bytes=vmem_limit,
        ),
    )(x_t, g_t, b_t, nx.reshape(B))

    out_flat = out_t.reshape(B, n_pad)
    if n_pad != N:
        out_flat = out_flat[:, :N]
    return out_flat


# ----------------------------------------------------------------------------
# Public wrapper.
# ----------------------------------------------------------------------------
def grn(x, gamma, beta, eps=EPS, data_format="channels_last", *,
        block_budget_bytes=None, vmem_limit_bytes=None):
    """GRN forward. channels_last: x (B,S,C), gamma/beta (1,C); channels_first: x (B,C,S), (C,1)."""
    if data_format not in ("channels_last", "channels_first"):
        raise ValueError(f"Unsupported data_format: {data_format}")

    B = x.shape[0]
    if data_format == "channels_last":
        _, S, C = x.shape
        assert gamma.shape == (1, C) and beta.shape == (1, C)
        gamma_full = jnp.broadcast_to(gamma.reshape(1, 1, C), (1, S, C))
        beta_full = jnp.broadcast_to(beta.reshape(1, 1, C), (1, S, C))
    else:
        _, C, S = x.shape
        assert gamma.shape == (C, 1) and beta.shape == (C, 1)
        gamma_full = jnp.broadcast_to(gamma.reshape(1, C, 1), (1, C, S))
        beta_full = jnp.broadcast_to(beta.reshape(1, C, 1), (1, C, S))
    # TODO(synk): when C % 128 == 0 the wrapper-side broadcast of gamma/beta could be skipped
    # by tiling x as (bt, S_tile, C) and broadcasting gamma/beta across sublanes in-kernel.

    # Lane-dense flattening: the per-batch slab becomes R = ceil(N/128) rows of 128 lanes.
    N = S * C
    x_flat = x.reshape(B, N)
    gamma_flat = gamma_full.reshape(1, N)
    beta_flat = beta_full.reshape(1, N)

    default_limit, default_budget = _vmem_budgets()
    vmem_limit = default_limit if vmem_limit_bytes is None else int(vmem_limit_bytes)
    budget = default_budget if block_budget_bytes is None else int(block_budget_bytes)

    itemsize = jnp.dtype(x.dtype).itemsize
    p_itemsize = jnp.dtype(gamma_flat.dtype).itemsize

    R0 = pl.cdiv(N, _LANE)
    chunk = min(R0, _CHUNK_SUBLANES)
    # Fused per-batch-row working set: 2x double-buffered input + 2x output blocks, plus a few
    # O(chunk) f32 temporaries (the reduce/epilogue are chunked in-kernel).
    per_row = R0 * _LANE * 4 * itemsize + chunk * _LANE * 12
    fixed = 4 * R0 * _LANE * p_itemsize           # gamma + beta buffers (constant index map)
    rows_fit = (budget - fixed) // per_row if budget > fixed else 0

    if rows_fit >= 1:
        bt = int(min(B, rows_fit))
        # Keep >= 2 grid steps whenever B >= 2 (>= ~8 when possible): prefetch/writeback
        # overlap on all generations and megacore sharding on v7x.
        bt = min(bt, max(1, B // 8))
        while B % bt:                              # partial batch blocks avoided: bt | B
            bt -= 1

        n_pad = R0 * _LANE

        def to_rows(a):
            if a.shape[1] != n_pad:
                a = jnp.pad(a, ((0, 0), (0, n_pad - a.shape[1])))
            return a.reshape(a.shape[0], R0, _LANE)

        out_t = _grn_fused(to_rows(x_flat), to_rows(gamma_flat), to_rows(beta_flat),
                           eps, bt, vmem_limit)
        out_flat = out_t.reshape(B, n_pad)
        if n_pad != N:
            out_flat = out_flat[:, :N]
        return out_flat.reshape(x.shape)

    # One flattened row is too large for the VMEM budget -> size-robust two-pass fallback.
    out_flat = _grn_two_pass(x_flat, gamma_flat, beta_flat, eps, budget, vmem_limit)
    return out_flat.reshape(x.shape)


def grn_channels_last(x, gamma, beta, eps=EPS, **kw):
    return grn(x, gamma, beta, eps, data_format="channels_last", **kw)


def grn_reference(x, gamma, beta, eps=EPS, data_format="channels_last"):
    """Pure-JAX reference matching the PyTorch forward exactly."""
    x32 = x.astype(jnp.float32)
    g_x = jnp.sqrt(jnp.sum(x32 * x32, axis=(1, 2), keepdims=True))        # (B, 1, 1)
    ch_dim = -1 if data_format == "channels_last" else 1
    n_x = g_x / (jnp.mean(g_x, axis=ch_dim, keepdims=True) + eps)
    out = gamma[None].astype(jnp.float32) * (x32 * n_x) + beta[None].astype(jnp.float32) + x32
    return out.astype(x.dtype)


if __name__ == "__main__":
    key = jax.random.PRNGKey(0)
    kx, kg, kb, kx2, kg2, kb2, kx3, kx4 = jax.random.split(key, 8)

    # --- Test 1: channels_last, fused single-pass path ---------------------------------
    B, S, C = 2, 8, 32
    x = jax.random.normal(kx, (B, S, C), dtype=jnp.float32)
    # Module __init__ uses zeros; use small random values so the normalization is exercised.
    gamma = 0.1 * jax.random.normal(kg, (1, C), dtype=jnp.float32)
    beta = 0.1 * jax.random.normal(kb, (1, C), dtype=jnp.float32)
    out = jax.block_until_ready(grn(x, gamma, beta))
    ref = grn_reference(x, gamma, beta)
    assert out.shape == (B, S, C)
    assert jnp.allclose(out, ref, atol=1e-5, rtol=1e-5), "channels_last fused path mismatch"

    # --- Test 2: channels_first through the same fused kernel --------------------------
    xcf = jax.random.normal(kx2, (2, 32, 8), dtype=jnp.float32)            # (B, C, S)
    gcf = 0.1 * jax.random.normal(kg2, (32, 1), dtype=jnp.float32)
    bcf = 0.1 * jax.random.normal(kb2, (32, 1), dtype=jnp.float32)
    out_cf = jax.block_until_ready(grn(xcf, gcf, bcf, data_format="channels_first"))
    ref_cf = grn_reference(xcf, gcf, bcf, data_format="channels_first")
    assert out_cf.shape == xcf.shape
    assert jnp.allclose(out_cf, ref_cf, atol=1e-5, rtol=1e-5), "channels_first path mismatch"

    # --- Test 3: force the two-pass fallback (tiny block budget, padded/tiled reduce) --
    B3, S3, C3 = 3, 40, 48                                                 # N=1920 -> pads to 2048
    x3 = jax.random.normal(kx3, (B3, S3, C3), dtype=jnp.float32)
    gamma3 = 0.1 * jax.random.normal(kg, (1, C3), dtype=jnp.float32)
    beta3 = 0.1 * jax.random.normal(kb, (1, C3), dtype=jnp.float32)
    out3 = jax.block_until_ready(grn(x3, gamma3, beta3, block_budget_bytes=4096))
    ref3 = grn_reference(x3, gamma3, beta3)
    assert out3.shape == (B3, S3, C3)
    assert jnp.allclose(out3, ref3, atol=1e-5, rtol=1e-5), "two-pass fallback mismatch"

    # --- Test 4: larger batch exercising bt > 1 and a multi-step fused grid ------------
    B4 = 16
    x4 = jax.random.normal(kx4, (B4, S, C), dtype=jnp.float32)
    out4 = jax.block_until_ready(grn(x4, gamma, beta))
    ref4 = grn_reference(x4, gamma, beta)
    assert out4.shape == (B4, S, C)
    assert jnp.allclose(out4, ref4, atol=1e-5, rtol=1e-5), "multi-row fused path mismatch"

    print("KERNEL_OK")
</pallas_src>

<mosaic_0001>
module attributes {stable_mosaic.version = 11 : i64} {
  func.func @_grn_fused_kernel(%arg0: i32, %arg1: memref<1x2x128xf32, #tpu.memory_space<vmem>>, %arg2: memref<1x2x128xf32, #tpu.memory_space<vmem>>, %arg3: memref<1x2x128xf32, #tpu.memory_space<vmem>>, %arg4: memref<1x2x128xf32, #tpu.memory_space<vmem>>) attributes {dimension_semantics = [#tpu.dimension_semantics<parallel>], iteration_bounds = array<i64: 2>, scalar_prefetch = 0 : i64, scratch_operands = 0 : i64, tpu.core_type = #tpu.core_type<tc>, window_params = [{transform_indices = @transform_0, window_bounds = array<i64: 1, 2, 128>}, {pipeline_mode = #tpu.pipeline_mode<synchronous>, transform_indices = @transform_1, window_bounds = array<i64: 1, 2, 128>}, {pipeline_mode = #tpu.pipeline_mode<synchronous>, transform_indices = @transform_2, window_bounds = array<i64: 1, 2, 128>}, {transform_indices = @transform_3, window_bounds = array<i64: 1, 2, 128>}]} {
    %cst = arith.constant 0.000000e+00 : f32
    %0 = vector.broadcast %cst : f32 to vector<1x1x1xf32>
    %c0 = arith.constant 0 : index
    %c0_0 = arith.constant 0 : index
    %c0_1 = arith.constant 0 : index
    %1 = vector.load %arg1[%c0, %c0_0, %c0_1] : memref<1x2x128xf32, #tpu.memory_space<vmem>>, vector<1x2x128xf32>
    %2 = arith.mulf %1, %1 : vector<1x2x128xf32>
    %cst_2 = arith.constant dense<0.000000e+00> : vector<1xf32>
    %3 = vector.multi_reduction <add>, %2, %cst_2 [1, 2] : vector<1x2x128xf32> to vector<1xf32>
    %4 = vector.shape_cast %3 : vector<1xf32> to vector<1x1x1xf32>
    %5 = arith.addf %0, %4 : vector<1x1x1xf32>
    %6 = math.sqrt %5 : vector<1x1x1xf32>
    %cst_3 = arith.constant 9.99999974E-6 : f32
    %7 = vector.broadcast %cst_3 : f32 to vector<1x1x1xf32>
    %8 = arith.addf %6, %7 : vector<1x1x1xf32>
    %9 = arith.divf %6, %8 : vector<1x1x1xf32>
    %c0_4 = arith.constant 0 : index
    %c0_5 = arith.constant 0 : index
    %c0_6 = arith.constant 0 : index
    %10 = vector.load %arg1[%c0_4, %c0_5, %c0_6] : memref<1x2x128xf32, #tpu.memory_space<vmem>>, vector<1x2x128xf32>
    %c0_7 = arith.constant 0 : index
    %c0_8 = arith.constant 0 : index
    %c0_9 = arith.constant 0 : index
    %11 = vector.load %arg2[%c0_7, %c0_8, %c0_9] : memref<1x2x128xf32, #tpu.memory_space<vmem>>, vector<1x2x128xf32>
    %c0_10 = arith.constant 0 : index
    %c0_11 = arith.constant 0 : index
    %c0_12 = arith.constant 0 : index
    %12 = vector.load %arg3[%c0_10, %c0_11, %c0_12] : memref<1x2x128xf32, #tpu.memory_space<vmem>>, vector<1x2x128xf32>
    %13 = vector.broadcast %9 : vector<1x1x1xf32> to vector<1x2x128xf32>
    %14 = arith.mulf %11, %13 : vector<1x2x128xf32>
    %cst_13 = arith.constant 1.000000e+00 : f32
    %15 = vector.broadcast %cst_13 : f32 to vector<1x2x128xf32>
    %16 = arith.addf %14, %15 : vector<1x2x128xf32>
    %17 = arith.mulf %10, %16 : vector<1x2x128xf32>
    %18 = arith.addf %17, %12 : vector<1x2x128xf32>
    %c0_14 = arith.constant 0 : index
    %c0_15 = arith.constant 0 : index
    %c0_16 = arith.constant 0 : index
    %19 = vector.load %arg4[%c0_14, %c0_15, %c0_16] : memref<1x2x128xf32, #tpu.memory_space<vmem>>, vector<1x2x128xf32>
    tpu.vector_store %arg4[%c0_14, %c0_15, %c0_16], %18 {strides = array<i32>} : memref<1x2x128xf32, #tpu.memory_space<vmem>>, vector<1x2x128xf32>,
    return
  }
  func.func @transform_0(%arg0: i32) -> (i32, i32, i32) {
    %c0_i32 = arith.constant 0 : i32
    %c0_i32_0 = arith.constant 0 : i32
    %c0_i32_1 = arith.constant 0 : i32
    return %arg0, %c0_i32, %c0_i32_0 : i32, i32, i32
  }
  func.func @transform_1(%arg0: i32) -> (i32, i32, i32) {
    %c0_i32 = arith.constant 0 : i32
    %c0_i32_0 = arith.constant 0 : i32
    %c0_i32_1 = arith.constant 0 : i32
    %c0_i32_2 = arith.constant 0 : i32
    return %c0_i32, %c0_i32_0, %c0_i32_1 : i32, i32, i32
  }
  func.func @transform_2(%arg0: i32) -> (i32, i32, i32) {
    %c0_i32 = arith.constant 0 : i32
    %c0_i32_0 = arith.constant 0 : i32
    %c0_i32_1 = arith.constant 0 : i32
    %c0_i32_2 = arith.constant 0 : i32
    return %c0_i32, %c0_i32_0, %c0_i32_1 : i32, i32, i32
  }
  func.func @transform_3(%arg0: i32) -> (i32, i32, i32) {
    %c0_i32 = arith.constant 0 : i32
    %c0_i32_0 = arith.constant 0 : i32
    %c0_i32_1 = arith.constant 0 : i32
    return %arg0, %c0_i32, %c0_i32_0 : i32, i32, i32
  }
}

</mosaic_0001>

<bundles_post_ra>
// kernel: tpu_custom_call.1
= control target key start
LH: loop header
LB: loop body
LE: loop exit
PB: predicated region body
PF: predicated region fallthrough
CT: control target
= control target key end

     0   :  { %8 = vsyncpa [#allocation3], 0  ;;  %s842_s0 = inlined_call_operand.hbm [shape: f32[2,2,128], index: 0, kind: input, shape index: {}]   ;;  %s843_s1 = inlined_call_operand.hbm [shape: f32[1,2,128], index: 1, kind: input, shape index: {}]   ;;  %s844_s2 = inlined_call_operand.hbm [shape: f32[1,2,128], index: 2, kind: input, shape index: {}]   ;;  %s845_s3 = inlined_call_operand.hbm [shape: f32[2,2,128], index: 3, kind: output, shape index: {}]  }
   0x1   :  { %10 = vsyncpa [#allocation3 + $0x1], 0 }
   0x2   :  { %11 = vsyncpa [#allocation6], 0 }
   0x3   :  { %12 = vsyncpa [#allocation4], 0 }
   0x4   :  { %14 = vsyncpa [#allocation4 + $0x1], 0  ;;  %s613_s12 = smov 0   ;;  %s615_s13 = smov 0  }
   0x5   :  { %s617_s14 = smov 0   ;;  %s619_s15 = smov 0  }
   0x6 LB: > { %s634_s16 = sadd.s32 4294967295, %s587_s15   ;;  %s344_s17 = sadd.s32 4294967294, %s587_s15   ;;  %s587_s15 = sphi %s619_s15, %s865_s15   ;;  %s583_s14 = sphi %s617_s14, %s864_s14   ;;  %s579_s13 = sphi %s615_s13, %s863_s13   ;;  %s575_s12 = sphi %s613_s12, %s862_s12  }
   0x7   : > { %p40_p0 = scmp.ne.s32.totalorder %s579_s13, %s575_s12  ;;  %p846_p1 = scmp.eq.s32.totalorder %s634_s16, 0 }
   0x8   : > { %p112_p3 = scmp.eq.s32.totalorder %s344_s17, 1  ;;  %p345_p5 = scmp.ge.s32.totalorder %s587_s15, 1 }
   0x9   : > { %p643_p4 = por %p846_p1, %p40_p0  ;;  %p119_p7 = scmp.lt.s32.totalorder %s587_s15, 3 }
   0xa   : > { %p648_p6 = por %p112_p3, %p40_p0  ;;  %s589_s21 = smov [#allocation5]  }
   0xb   : > { %s849_s18 = scalar_select %p643_p4, 1, 0 }
   0xc   : > { %s850_s19 = scalar_select %p648_p6, 1, 0 }
   0xd   : > { %p653_p8 = pnand %p345_p5, %p119_p7  ;;  %s132_s22 = sshll.u32 %s589_s21, 4  ;;  %s133_s22 = int_to_ptr.vmem [resolvable:$true] %s132_s22 }
   0xe   : > { %s590_s23 = smov [#allocation7]   ;;  %s669_s26 = sadd.s32 1, %s587_s15  }
   0xf   : > { %s851_s20 = scalar_select %p653_p8, 1, 0 }
  0x10   : > { %p372_p10 = pneg %p653_p8  ;;  %s143_s24 = sshll.u32 %s590_s23, 4  ;;  %s666_s24 = int_to_ptr.vmem [resolvable:$true] %s143_s24 }
  0x11   : > { %s24_s27 = ssub.s32 %s587_s15, %s669_s26  ;;  %s431_s30 = scalar_lea.hbm %s843_s1, 32 }
  0x12   : > { %p662_p11 = pnand %p372_p10, %p846_p1  ;;  %p432_p12 = scmp.ne.s32.totalorder %s843_s1, %s431_s30 }
  0x13   : > { %p438_p5 = scmp.lt.u32.totalorder %s431_s30, %s843_s1 }
  0x14   : > { %p433_p13 = pneg %p662_p11 }
  0x16   : > { %p434_p0 = pnand %p433_p13, %p432_p12 }
  0x18   : > { %p435_p3 = pneg %p434_p0 }
  0x1a   : > { %p440_p7 = pnand %p438_p5, %p435_p3 }
  0x1c   : > { %443 = shalt.err (!%p440_p7)
}
  0x1d   : > { %s444_s8 = scalar_lea.vmem %s133_s22, 32  ;;  %p452_p2 = scmp.lt.s32.totalorder %s133_s22, %s133_s22 }
  0x1e   : > { %p445_p10 = scmp.ne.s32.totalorder %s133_s22, %s444_s8  ;;  %p453_p6 = scmp.lt.s32.totalorder %s444_s8, %s444_s8 }
  0x20   : > { %p447_p9 = pnand %p445_p10, %p433_p13  ;;  %p454_p4 = por %p453_p6, %p452_p2 }
  0x22   : > { %p448_p1 = pneg %p447_p9 }
  0x24   : > { %p455_p8 = pnand %p454_p4, %p448_p1 }
  0x26   : > { %458 = shalt.err (!%p455_p8)
}
  0x27   : > { %375 = dma.hbm_to_vmem [thread:$0]  (!%p662_p11), %s843_s1, 32, %s133_s22, [#allocation6]  }
  0x28   : > { %s459_s21 = scalar_lea.hbm %s844_s2, 32 }
  0x29   : > { %p460_p9 = scmp.ne.s32.totalorder %s844_s2, %s459_s21  ;;  %p466_p4 = scmp.lt.u32.totalorder %s459_s21, %s844_s2 }
  0x2b   : > { %p462_p2 = pnand %p460_p9, %p433_p13 }
  0x2d   : > { %p463_p1 = pneg %p462_p2 }
  0x2f   : > { %p468_p6 = pnand %p466_p4, %p463_p1 }
  0x31   : > { %471 = shalt.err (!%p468_p6)
}
  0x32   : > { %s472_s22 = scalar_lea.vmem %s666_s24, 32  ;;  %p480_p3 = scmp.lt.s32.totalorder %s666_s24, %s666_s24 }
  0x33   : > { %p473_p8 = scmp.ne.s32.totalorder %s666_s24, %s472_s22  ;;  %p481_p5 = scmp.lt.s32.totalorder %s472_s22, %s472_s22 }
  0x35   : > { %p475_p12 = pnand %p473_p8, %p433_p13  ;;  %p482_p7 = por %p481_p5, %p480_p3 }
  0x37   : > { %p476_p0 = pneg %p475_p12 }
  0x39   : > { %p483_p10 = pnand %p482_p7, %p476_p0 }
  0x3b   : > { %486 = shalt.err (!%p483_p10)
}
  0x3c   : > { %378 = dma.hbm_to_vmem [thread:$0]  (!%p662_p11), %s844_s2, 32, %s666_s24, [#allocation6]  }
  0x3d   : > { %p25_p13 = scmp.eq.s32.totalorder %s24_s27, 0  ;;  %s27_s6 = sadd.s32 1, %s583_s14 }
  0x3e   : > { %p34_p9 = scmp.ne.s32.totalorder %s583_s14, %s579_s13  ;;  %p35_p2 = scmp.eq.s32.totalorder %s587_s15, 0 }
  0x3f   : > { %s728_s25 = scalar_select %p25_p13, %s583_s14, %s27_s6  }
  0x40   : > { %p36_p1 = por %p35_p2, %p34_p9  ;;  %p853_p4 = scmp.eq.s32.totalorder %s634_s16, 1 }
  0x41   : > { %p389_p8 = scmp.lt.s32.totalorder %s587_s15, 2  ;;  %s154_s8 = sand.u32 1, %s583_s14  }
  0x42   : > { %p732_p6 = por %p853_p4, %p34_p9  ;;  %s349_s9 = sshll.u32 %s154_s8, 1 }
  0x43   : > { %s350_s10 = sshll.u32 %s587_s15, 5  ;;  %s158_s27 = scalar_lea.vmem [#allocation2], %s349_s9 }
  0x44   : > { %s742_s24 = scalar_lea.hbm %s842_s0, %s350_s10  ;;  %s165_s21 = sshll.u32 %s158_s27, 4  ;;  %s744_s21 = int_to_ptr.vmem [resolvable:$true] %s165_s21 }
  0x45   : > { %p746_p11 = pnand %p389_p8, %p36_p1  ;;  %s155_s28 = scalar_lea.sflag [#allocation3], %s154_s8 }
  0x46   : > { %s487_s29 = scalar_lea.hbm %s742_s24, 32  ;;  %s492_s4 = scalar_lea.hbm %s842_s0, 64 }
  0x47   : > { %p488_p12 = scmp.ne.s32.totalorder %s742_s24, %s487_s29  ;;  %p489_p0 = pneg %p746_p11 }
  0x48   : > { %p493_p7 = scmp.lt.u32.totalorder %s742_s24, %s842_s0  ;;  %p494_p10 = scmp.lt.u32.totalorder %s492_s4, %s487_s29 }
  0x49   : > { %p490_p3 = pnand %p489_p0, %p488_p12  ;;  %p496_p9 = scmp.lt.u32.totalorder %s487_s29, %s742_s24 }
  0x4a   : > { %p495_p13 = por %p494_p10, %p493_p7 }
  0x4b   : > { %p491_p5 = pneg %p490_p3 }
  0x4c   : > { %p497_p2 = por %p496_p9, %p495_p13 }
  0x4e   : > { %p498_p1 = pnand %p497_p2, %p491_p5 }
  0x50   : > { %501 = shalt.err (!%p498_p1)
}
  0x51   : > { %s502_s8 = scalar_lea.vmem %s744_s21, 32  ;;  %s591_s9 = smov [#allocation2]  }
  0x52   : > { %p503_p4 = scmp.ne.s32.totalorder %s744_s21, %s502_s8  ;;  %s507_s10 = sshll.u32 %s591_s9, 4  ;;  %s508_s10 = int_to_ptr.vmem [resolvable:$false] %s507_s10 }
  0x53   : > { %s509_s11 = scalar_lea.vmem %s508_s10, 64  ;;  %p510_p3 = scmp.lt.s32.totalorder %s744_s21, %s508_s10 }
  0x54   : > { %p505_p8 = pnand %p503_p4, %p489_p0  ;;  %p511_p7 = scmp.lt.s32.totalorder %s509_s11, %s502_s8 }
  0x56   : > { %p506_p12 = pneg %p505_p8  ;;  %p512_p10 = por %p511_p7, %p510_p3 }
  0x58   : > { %p513_p13 = pnand %p512_p10, %p506_p12 }
  0x5a   : > { %516 = shalt.err (!%p513_p13)
}
  0x5b   : > { %382 = dma.hbm_to_vmem [thread:$0]  (!%p746_p11), %s742_s24, 32, %s744_s21, %s155_s28  }
  0x5c   : > { %p856_p5 = scmp.ne.s32.totalorder %s851_s20, 0 }
  0x5d   : > { %s778_s17 = sand.u32 (!%p856_p5), 1, %s579_s13   ;;  %p857_p0 = scmp.ne.s32.totalorder (!%p856_p5), %s849_s18, 0 }
  0x5e   : > { %174 = sbr.rel (%p856_p5) target bundleno = 315 (0x13b), region = 32  ;;  %s352_s27 = sshll.u32 (!%p856_p5), %s778_s17, 1 }
  0x5f   : > { %s177_s29 = scalar_lea.sflag (!%p856_p5), [#allocation3], %s778_s17  ;;  %s180_s30 = scalar_lea.vmem (!%p856_p5), [#allocation2], %s352_s27 }
  0x65   : > { %562 = dma.done.wait (%p857_p0), %s177_s29, 32  }
  0x66   : > { %564 = vsyncadd (%p857_p0), %s177_s29, 4294967264  ;;  %p858_p11 = scmp.eq.s32.totalorder %s634_s16, 0 }
  0x68   : > { %566 = dma.done.wait (%p858_p11), [#allocation6], 64   ;;  %p859_p9 = pmov %p858_p11 }
  0x69   : > { %v211_v0 = vld [vmem:[%s180_s30] sm:$0x3]  ;;  %vm213_vm0 = vcmask 1041408   ;;  %v234_v17 = vld [vmem:[#allocation5] sm:$0x3]  ;;  %s357_s18 = sshll.u32 %s634_s16, 5 }
  0x6a   : > { %568 = vsyncadd (%p859_p9), [#allocation6], 4294967232  ;;  %v212_v1 = vmul.f32 %v211_v0, %v211_v0  ;;  %v235_v21 = vld [vmem:[#allocation7] sm:$0x3]  ;;  %s210_s20 = scalar_lea.vmem [#allocation8], %s352_s27  ;;  %s798_s28 = scalar_lea.hbm %s845_s3, %s357_s18 }
  0x6b   : > { %s255_s24 = sshll.u32 %s210_s20, 4  ;;  %s242_s22 = scalar_lea.sflag [#allocation4], %s778_s17  ;;  %s800_s24 = int_to_ptr.vmem [resolvable:$true] %s255_s24 }
  0x6c   : > { %v214_v2 = vsel %vm213_vm0, %v212_v1, 0.0  ;;  %s517_s4 = scalar_lea.vmem %s800_s24, 32  ;;  %s592_s16 = smov [#allocation8]  }
  0x6d   : > { %215 = vadd.xlane.f32.xlu0 %v214_v2  ;;  %p518_p2 = scmp.ne.s32.totalorder %s800_s24, %s517_s4  ;;  %s521_s5 = sshll.u32 %s592_s16, 4  ;;  %s522_s5 = int_to_ptr.vmem [resolvable:$false] %s521_s5 }
  0x6e   : > { %s523_s6 = scalar_lea.vmem %s522_s5, 64  ;;  %p524_p8 = scmp.lt.s32.totalorder %s800_s24, %s522_s5 }
  0x6f   : > { %p519_p1 = pnand %p518_p2, %p732_p6  ;;  %p525_p12 = scmp.lt.s32.totalorder %s523_s6, %s517_s4 }
  0x71   : > { %p520_p4 = pneg %p519_p1  ;;  %p526_p3 = por %p525_p12, %p524_p8 }
  0x73   : > { %p527_p7 = pnand %p526_p3, %p520_p4 }
  0xfa   : > { %v216_v3 = vpop.xlane.xlu0 %215 }
  0xfb   : > { %v217_v4 = vrot.slane %v216_v3, 4 }
  0xfd   : > { %v218_v5 = vadd.f32 %v217_v4, %v216_v3 }
  0xff   : > { %v219_v6 = vrot.slane %v218_v5, 2 }
 0x101   : > { %v220_v7 = vadd.f32 %v219_v6, %v218_v5 }
 0x103   : > { %v221_v8 = vrot.slane %v220_v7, 1 }
 0x105   : > { %v222_v9 = vadd.f32 %v221_v8, %v220_v7 }
 0x107   : > { %427 = vrsqrt.f32 %v222_v9  ;;  %vm226_vm1 = vcmp.eq.f32.partialorder %v222_v9, inf  ;;  %v229_v12 = vand.u32 2147483648, %v222_v9  ;;  %vm228_vm2 = vcmp.eq.f32.partialorder %v222_v9, 0.0 }
 0x111   : > { %v428_v10 = vpop.eup %427 }
 0x112   : > { %v225_v11 = vmul.f32 %v428_v10, %v222_v9 }
 0x114   : > { %v227_v13 = vsel %vm226_vm1, %v222_v9, %v225_v11 }
 0x115   : > { %v230_v14 = vsel %vm228_vm2, %v229_v12, %v227_v13 }
 0x116   : > { %v231_v15 = vadd.f32 1e-05, %v230_v14 }
 0x118   : > { %429 = vrcp.f32 %v231_v15 }
 0x122   : > { %v430_v16 = vpop.eup %429 }
 0x123   : > { %v233_v18 = vmul.f32 %v430_v16, %v230_v14 }
 0x125   : > { %v236_v19 = vmul.f32 %v234_v17, %v233_v18 }
 0x127   : > { %v237_v20 = vadd.f32 1.0, %v236_v19 }
 0x129   : > { %v238_v22 = vmul.f32 %v237_v20, %v211_v0 }
 0x12b   : > { %v239_v23 = vadd.f32 %v238_v22, %v235_v21 }
 0x12d   : > { %240 = vst [vmem:[%s210_s20] sm:$0x3] %v239_v23 }
 0x12e   : > { %530 = shalt.err (!%p527_p7)
}
 0x12f   : > { %s531_s8 = scalar_lea.hbm %s798_s28, 32  ;;  %s535_s11 = scalar_lea.hbm %s845_s3, 64 }
 0x130   : > { %p532_p10 = scmp.ne.s32.totalorder %s798_s28, %s531_s8  ;;  %p536_p0 = scmp.lt.u32.totalorder %s798_s28, %s845_s3 }
 0x131   : > { %p537_p11 = scmp.lt.u32.totalorder %s535_s11, %s531_s8  ;;  %p539_p2 = scmp.lt.u32.totalorder %s531_s8, %s798_s28 }
 0x132   : > { %p533_p13 = pnand %p532_p10, %p732_p6 }
 0x133   : > { %p538_p9 = por %p537_p11, %p536_p0 }
 0x134   : > { %p534_p5 = pneg %p533_p13 }
 0x135   : > { %p540_p1 = por %p539_p2, %p538_p9 }
 0x137   : > { %p541_p4 = pnand %p540_p1, %p534_p5 }
 0x139   : > { %544 = shalt.err (!%p541_p4)
}
 0x13a   : > { %370 = dma.vmem_to_hbm [thread:$0]  (%p732_p6), %s800_s24, 32, %s798_s28, %s242_s22  }
 0x13b PF: > { %s267_s29 = sand.u32 1, %s575_s12   ;;  %p860_p8 = scmp.ne.s32.totalorder %s850_s19, 0 }
 0x13c   : > { %p861_p12 = scmp.ge.s32.totalorder %s587_s15, 2  ;;  %s268_s30 = scalar_lea.sflag [#allocation4], %s267_s29 }
 0x13e   : > { %p384_p3 = pnand %p861_p12, %p860_p8 }
 0x140   : > { %570 = dma.done.wait (!%p384_p3), %s268_s30, 32  }
 0x141   : > { %572 = vsyncadd (!%p384_p3), %s268_s30, 4294967264  ;;  %p17_p7 = scmp.ge.s32.totalorder %s669_s26, 4   ;;  %s862_s12 = smov %s579_s13 }
 0x142   : > { %s863_s13 = smov %s583_s14  ;;  %s864_s14 = smov %s728_s25 }
 0x143   : > { %s865_s15 = smov %s669_s26  ;;  %19 = sbr.rel (!%p17_p7) target bundleno = 6 (0x6), region = 85 }
 0x14a   :  { %273 = vsyncpa [#allocation3], 1 }
 0x14b   :  { %275 = vsyncpa [#allocation3 + $0x1], 1 }
 0x14c   :  { %276 = vsyncpa [#allocation6], 1 }
 0x14d   :  { %277 = vsyncpa [#allocation4], 1 }
 0x14e   :  { %279 = vsyncpa [#allocation4 + $0x1], 1 }

</bundles_post_ra>
